<compile_context>
chip_gen: v6e
topology: v6e:2x2x1
jax: 0.10.0
libtpu: 0.0.40
codegen_flags: <defaults>
</compile_context>

<pallas_src>
import functools

import jax
import jax.numpy as jnp
from jax.experimental import pallas as pl
from jax.experimental.pallas import tpu as pltpu

_LANE = 128


def _xor_mlp_kernel(params_ref, x_ref, o_ref, *, input_dim, hidden_dim,
                    output_dim, approx_sigmoid):
    """Fused fc1+sigmoid+fc2+sigmoid on sublane-dense batch slabs.

    params_ref : SMEM (hidden*input + hidden + output*hidden + output,) f32
                 packed [w1 row-major | b1 | w2 row-major | b2]
    x_ref      : VMEM (input_dim,  tile_rows, 128) f32  (batch = rows x lanes)
    o_ref      : VMEM (output_dim, tile_rows, 128) f32
    """
    w1_off = 0
    b1_off = w1_off + hidden_dim * input_dim
    w2_off = b1_off + hidden_dim
    b2_off = w2_off + output_dim * hidden_dim

    def _sigmoid(z):
        if approx_sigmoid:
            # exp on the EUP, then EUP vrcp instead of an exact VPU divide.
            return pl.reciprocal(1.0 + jnp.exp(-z), approx=True)
        return jax.nn.sigmoid(z)

    # fc1 + sigmoid: h[j] = sigmoid(sum_k w1[j,k] * x[k] + b1[j])
    # x_ref[k] is a dense (tile_rows, 128) block -> pure VPU broadcast FMAs.
    hidden = []
    for j in range(hidden_dim):
        acc = x_ref[0] * params_ref[w1_off + j * input_dim]
        for k in range(1, input_dim):
            acc = acc + x_ref[k] * params_ref[w1_off + j * input_dim + k]
        hidden.append(_sigmoid(acc + params_ref[b1_off + j]))

    # fc2 + sigmoid: y[m] = sigmoid(sum_j w2[m,j] * h[j] + b2[m])
    for m in range(output_dim):
        acc = hidden[0] * params_ref[w2_off + m * hidden_dim]
        for j in range(1, hidden_dim):
            acc = acc + hidden[j] * params_ref[w2_off + m * hidden_dim + j]
        o_ref[m] = _sigmoid(acc + params_ref[b2_off + m])


def _choose_rows_tiling(rows_total, max_tile_rows):
    """Pick a (8-aligned) row tile; prefer >= 2 grid steps for 2-TC chips."""
    if rows_total > max_tile_rows:
        tile_rows = max_tile_rows                      # multiple of 8 by construction
    elif rows_total >= 16:
        tile_rows = (((rows_total + 1) // 2) + 7) // 8 * 8   # ~half, 8-aligned
    else:
        tile_rows = rows_total                         # block == full dim (allowed)
    padded_rows = (rows_total + tile_rows - 1) // tile_rows * tile_rows
    return tile_rows, padded_rows


def _xor_model_forward(x, w1, b1, w2, b2, *, max_tile_rows=1024,
                       approx_sigmoid=True):
    """Pallas forward of XOrModel (nn.Linear semantics: x @ w.T + b).

    x  : (B, input_dim) f32
    w1 : (hidden_dim, input_dim), b1 : (hidden_dim,)
    w2 : (output_dim, hidden_dim), b2 : (output_dim,)
    returns (B, output_dim) f32
    """
    B, input_dim = x.shape
    hidden_dim = w1.shape[0]
    output_dim = w2.shape[0]

    rows_total = max(1, (B + _LANE - 1) // _LANE)
    tile_rows, padded_rows = _choose_rows_tiling(rows_total, max_tile_rows)
    padded_b = padded_rows * _LANE

    # Feature-major, sublane-dense slabs: (input_dim, rows, 128).
    # Under jit this transpose/pad/reshape fuses into the single copy that
    # feeds the pallas_call (no separate full HBM pass of x).
    x_t = x.T.astype(jnp.float32)
    if padded_b != B:
        x_t = jnp.pad(x_t, ((0, 0), (0, padded_b - B)))
    x_slab = x_t.reshape(input_dim, padded_rows, _LANE)

    # Pack all weights/biases into one small SMEM array.
    params = jnp.concatenate([
        w1.reshape(-1), b1.reshape(-1), w2.reshape(-1), b2.reshape(-1)
    ]).astype(jnp.float32)

    kernel = functools.partial(
        _xor_mlp_kernel,
        input_dim=input_dim,
        hidden_dim=hidden_dim,
        output_dim=output_dim,
        approx_sigmoid=approx_sigmoid,
    )

    out_slab = pl.pallas_call(
        kernel,
        out_shape=jax.ShapeDtypeStruct((output_dim, padded_rows, _LANE),
                                       jnp.float32),
        grid=(padded_rows // tile_rows,),
        in_specs=[
            pl.BlockSpec(memory_space=pltpu.MemorySpace.SMEM),   # packed params
            pl.BlockSpec((input_dim, tile_rows, _LANE), lambda i: (0, i, 0)),
        ],
        out_specs=pl.BlockSpec((output_dim, tile_rows, _LANE),
                               lambda i: (0, i, 0)),
        compiler_params=pltpu.CompilerParams(
            dimension_semantics=("parallel",)),
    )(params, x_slab)

    # Back to PyTorch layout (B, output_dim); drop batch padding.
    return out_slab.reshape(output_dim, padded_b)[:, :B].T


xor_model_forward = jax.jit(
    _xor_model_forward, static_argnames=("max_tile_rows", "approx_sigmoid"))


def reference_forward(x, w1, b1, w2, b2):
    h = jax.nn.sigmoid(x @ w1.T + b1)
    return jax.nn.sigmoid(h @ w2.T + b2)


if __name__ == "__main__":
    # XOR problem: input_dim=2, hidden_dim=2 (fixed in the module), output_dim=1.
    input_dim, hidden_dim, output_dim = 2, 2, 1

    key = jax.random.PRNGKey(0)
    kx, kx2, k1, k2, k3, k4 = jax.random.split(key, 6)

    # Deterministic synthetic parameters (nn.Linear-style uniform init range).
    bound1 = 1.0 / jnp.sqrt(input_dim)
    bound2 = 1.0 / jnp.sqrt(hidden_dim)
    w1 = jax.random.uniform(k1, (hidden_dim, input_dim), jnp.float32, -bound1, bound1)
    b1 = jax.random.uniform(k2, (hidden_dim,), jnp.float32, -bound1, bound1)
    w2 = jax.random.uniform(k3, (output_dim, hidden_dim), jnp.float32, -bound2, bound2)
    b2 = jax.random.uniform(k4, (output_dim,), jnp.float32, -bound2, bound2)

    # Small XOR-style batch: 0/1 pairs (tiled) plus a little noise.
    batch = 8
    base = jnp.array([[0., 0.], [0., 1.], [1., 0.], [1., 1.]], jnp.float32)
    x_small = jnp.tile(base, (batch // 4, 1)) + 0.01 * jax.random.normal(
        kx, (batch, input_dim))
    ref_small = reference_forward(x_small, w1, b1, w2, b2)

    # Exact-sigmoid path: matches the reference tightly.
    out_exact = jax.block_until_ready(
        xor_model_forward(x_small, w1, b1, w2, b2, approx_sigmoid=False))
    assert out_exact.shape == (batch, output_dim), out_exact.shape
    assert jnp.allclose(out_exact, ref_small, atol=1e-5, rtol=1e-5), (
        out_exact, ref_small)

    # Default fast path (EUP approximate reciprocal inside the sigmoids).
    out_fast = jax.block_until_ready(xor_model_forward(x_small, w1, b1, w2, b2))
    assert out_fast.shape == (batch, output_dim), out_fast.shape
    assert jnp.allclose(out_fast, ref_small, atol=2e-3, rtol=2e-3), (
        out_fast, ref_small)

    # Larger batch exercises the sublane-dense, multi-grid-step tiled path.
    big = 4096
    x_big = jax.random.normal(kx2, (big, input_dim), jnp.float32)
    ref_big = reference_forward(x_big, w1, b1, w2, b2)
    out_big = jax.block_until_ready(xor_model_forward(x_big, w1, b1, w2, b2))
    assert out_big.shape == (big, output_dim), out_big.shape
    assert jnp.allclose(out_big, ref_big, atol=2e-3, rtol=2e-3)

    print("KERNEL_OK")
</pallas_src>

<mosaic_0001>
module attributes {stable_mosaic.version = 11 : i64} {
  func.func @_xor_mlp_kernel(%arg0: i32, %arg1: memref<9xf32, #tpu.memory_space<smem>>, %arg2: memref<2x1x128xf32, #tpu.memory_space<vmem>>, %arg3: memref<1x1x128xf32, #tpu.memory_space<vmem>>) attributes {dimension_semantics = [#tpu.dimension_semantics<parallel>], iteration_bounds = array<i64: 1>, scalar_prefetch = 0 : i64, scratch_operands = 0 : i64, tpu.core_type = #tpu.core_type<tc>, window_params = [{transform_indices = @transform_0, window_bounds = array<i64: 9>}, {transform_indices = @transform_1, window_bounds = array<i64: 2, 1, 128>}, {transform_indices = @transform_2, window_bounds = array<i64: 1, 1, 128>}]} {
    %c0 = arith.constant 0 : index
    %c0_0 = arith.constant 0 : index
    %c0_1 = arith.constant 0 : index
    %0 = vector.load %arg2[%c0, %c0_0, %c0_1] : memref<2x1x128xf32, #tpu.memory_space<vmem>>, vector<1x1x128xf32>
    %1 = vector.shape_cast %0 : vector<1x1x128xf32> to vector<1x128xf32>
    %c0_2 = arith.constant 0 : index
    %2 = memref.load %arg1[%c0_2] : memref<9xf32, #tpu.memory_space<smem>>
    %3 = vector.broadcast %2 : f32 to vector<1x128xf32>
    %4 = arith.mulf %1, %3 : vector<1x128xf32>
    %c1 = arith.constant 1 : index
    %c0_3 = arith.constant 0 : index
    %c0_4 = arith.constant 0 : index
    %5 = vector.load %arg2[%c1, %c0_3, %c0_4] : memref<2x1x128xf32, #tpu.memory_space<vmem>>, vector<1x1x128xf32>
    %6 = vector.shape_cast %5 : vector<1x1x128xf32> to vector<1x128xf32>
    %c1_5 = arith.constant 1 : index
    %7 = memref.load %arg1[%c1_5] : memref<9xf32, #tpu.memory_space<smem>>
    %8 = vector.broadcast %7 : f32 to vector<1x128xf32>
    %9 = arith.mulf %6, %8 : vector<1x128xf32>
    %10 = arith.addf %4, %9 : vector<1x128xf32>
    %c4 = arith.constant 4 : index
    %11 = memref.load %arg1[%c4] : memref<9xf32, #tpu.memory_space<smem>>
    %12 = vector.broadcast %11 : f32 to vector<1x128xf32>
    %13 = arith.addf %10, %12 : vector<1x128xf32>
    %14 = arith.negf %13 : vector<1x128xf32>
    %15 = math.exp %14 : vector<1x128xf32>
    %cst = arith.constant 1.000000e+00 : f32
    %16 = vector.broadcast %cst : f32 to vector<1x128xf32>
    %17 = arith.addf %16, %15 : vector<1x128xf32>
    %18 = arith.divf %16, %17 : vector<1x128xf32>
    %c0_6 = arith.constant 0 : index
    %c0_7 = arith.constant 0 : index
    %c0_8 = arith.constant 0 : index
    %19 = vector.load %arg2[%c0_6, %c0_7, %c0_8] : memref<2x1x128xf32, #tpu.memory_space<vmem>>, vector<1x1x128xf32>
    %20 = vector.shape_cast %19 : vector<1x1x128xf32> to vector<1x128xf32>
    %c2 = arith.constant 2 : index
    %21 = memref.load %arg1[%c2] : memref<9xf32, #tpu.memory_space<smem>>
    %22 = vector.broadcast %21 : f32 to vector<1x128xf32>
    %23 = arith.mulf %20, %22 : vector<1x128xf32>
    %c1_9 = arith.constant 1 : index
    %c0_10 = arith.constant 0 : index
    %c0_11 = arith.constant 0 : index
    %24 = vector.load %arg2[%c1_9, %c0_10, %c0_11] : memref<2x1x128xf32, #tpu.memory_space<vmem>>, vector<1x1x128xf32>
    %25 = vector.shape_cast %24 : vector<1x1x128xf32> to vector<1x128xf32>
    %c3 = arith.constant 3 : index
    %26 = memref.load %arg1[%c3] : memref<9xf32, #tpu.memory_space<smem>>
    %27 = vector.broadcast %26 : f32 to vector<1x128xf32>
    %28 = arith.mulf %25, %27 : vector<1x128xf32>
    %29 = arith.addf %23, %28 : vector<1x128xf32>
    %c5 = arith.constant 5 : index
    %30 = memref.load %arg1[%c5] : memref<9xf32, #tpu.memory_space<smem>>
    %31 = vector.broadcast %30 : f32 to vector<1x128xf32>
    %32 = arith.addf %29, %31 : vector<1x128xf32>
    %33 = arith.negf %32 : vector<1x128xf32>
    %34 = math.exp %33 : vector<1x128xf32>
    %cst_12 = arith.constant 1.000000e+00 : f32
    %35 = vector.broadcast %cst_12 : f32 to vector<1x128xf32>
    %36 = arith.addf %35, %34 : vector<1x128xf32>
    %37 = arith.divf %35, %36 : vector<1x128xf32>
    %c6 = arith.constant 6 : index
    %38 = memref.load %arg1[%c6] : memref<9xf32, #tpu.memory_space<smem>>
    %39 = vector.broadcast %38 : f32 to vector<1x128xf32>
    %40 = arith.mulf %18, %39 : vector<1x128xf32>
    %c7 = arith.constant 7 : index
    %41 = memref.load %arg1[%c7] : memref<9xf32, #tpu.memory_space<smem>>
    %42 = vector.broadcast %41 : f32 to vector<1x128xf32>
    %43 = arith.mulf %37, %42 : vector<1x128xf32>
    %44 = arith.addf %40, %43 : vector<1x128xf32>
    %c8 = arith.constant 8 : index
    %45 = memref.load %arg1[%c8] : memref<9xf32, #tpu.memory_space<smem>>
    %46 = vector.broadcast %45 : f32 to vector<1x128xf32>
    %47 = arith.addf %44, %46 : vector<1x128xf32>
    %48 = arith.negf %47 : vector<1x128xf32>
    %49 = math.exp %48 : vector<1x128xf32>
    %cst_13 = arith.constant 1.000000e+00 : f32
    %50 = vector.broadcast %cst_13 : f32 to vector<1x128xf32>
    %51 = arith.addf %50, %49 : vector<1x128xf32>
    %52 = arith.divf %50, %51 : vector<1x128xf32>
    %c0_14 = arith.constant 0 : index
    %c0_15 = arith.constant 0 : index
    %c0_16 = arith.constant 0 : index
    %53 = vector.load %arg3[%c0_14, %c0_15, %c0_16] : memref<1x1x128xf32, #tpu.memory_space<vmem>>, vector<1x1x128xf32>
    %54 = vector.shape_cast %53 : vector<1x1x128xf32> to vector<1x128xf32>
    %55 = vector.shape_cast %52 : vector<1x128xf32> to vector<1x1x128xf32>
    tpu.vector_store %arg3[%c0_14, %c0_15, %c0_16], %55 {strides = array<i32>} : memref<1x1x128xf32, #tpu.memory_space<vmem>>, vector<1x1x128xf32>,
    return
  }
  func.func @transform_0(%arg0: i32) -> i32 {
    %c0_i32 = arith.constant 0 : i32
    %c0_i32_0 = arith.constant 0 : i32
    return %c0_i32 : i32
  }
  func.func @transform_1(%arg0: i32) -> (i32, i32, i32) {
    %c0_i32 = arith.constant 0 : i32
    %c0_i32_0 = arith.constant 0 : i32
    %c0_i32_1 = arith.constant 0 : i32
    return %c0_i32, %arg0, %c0_i32_0 : i32, i32, i32
  }
  func.func @transform_2(%arg0: i32) -> (i32, i32, i32) {
    %c0_i32 = arith.constant 0 : i32
    %c0_i32_0 = arith.constant 0 : i32
    %c0_i32_1 = arith.constant 0 : i32
    return %c0_i32, %arg0, %c0_i32_0 : i32, i32, i32
  }
}

</mosaic_0001>

<bundles_post_ra>
// kernel: _xor_model_forward.1
= control target key start
LH: loop header
LB: loop body
LE: loop exit
PB: predicated region body
PF: predicated region fallthrough
CT: control target
= control target key end

     0   :  { %7 = vsyncpa [#allocation3], 0  ;;  %s148_s0 = inlined_call_operand.vmem [shape: f32[9], index: 0, kind: input, shape index: {}]   ;;  %s149_s1 = inlined_call_operand.vmem [shape: f32[2,1,128], index: 1, kind: input, shape index: {}]   ;;  %s150_s2 = inlined_call_operand.vmem [shape: f32[1,1,128], index: 2, kind: output, shape index: {}]  }
   0x1   :  { %s14_s11 = sshll.u32 %s148_s0, 4  ;;  %s15_s11 = int_to_ptr.vmem [resolvable:$true] %s14_s11 }
   0x2   :  { %s106_s12 = scalar_lea.vmem %s15_s11, 16  ;;  %p111_p1 = scmp.lt.s32.totalorder %s15_s11, %s15_s11 }
   0x3   :  { %p107_p0 = scmp.ne.s32.totalorder %s15_s11, %s106_s12  ;;  %p112_p2 = scmp.lt.s32.totalorder %s106_s12, %s106_s12 }
   0x5   :  { %p113_p3 = por %p112_p2, %p111_p1 }
   0x7   :  { %p114_p4 = pnand %p113_p3, %p107_p0 }
   0x9   :  { %117 = shalt.err (!%p114_p4)
}
   0xa   :  { %s120_s13 = smov [#allocation2]  }
   0xb   :  { %17 = dma.vmem_to_smem %s15_s11, 16, %s120_s13, [#allocation3]  }
   0xc   :  { %118 = dma.done.wait [#allocation3], 16  }
   0xd   :  { %119 = vsyncadd [#allocation3], 4294967280 }
   0xe   :  { %23 = sfence }
   0xf   :  { %s25_s14 = sld [smem:[#allocation2]]  ;;  %v24_v0 = vld [vmem:[%s149_s1] sm:$0x1]  ;;  %v81_v1 = vld [vmem:[%s149_s1 + $0x1] sm:$0x1] }
  0x10   :  { %s82_s15 = sld [smem:[#allocation2 + $0x1]] }
  0x11   :  { %s83_s16 = sld [smem:[#allocation2 + $0x4]] }
  0x12   :  { %s85_s17 = sld [smem:[#allocation2 + $0x2]] }
  0x13   :  { %s86_s0 = sld [smem:[#allocation2 + $0x3]] }
  0x14   :  { %s87_s22 = sld [smem:[#allocation2 + $0x5]] }
  0x15   :  { %v26_v2 = vstv %s25_s14  ;;  %s89_s1 = sld [smem:[#allocation2 + $0x6]] }
  0x16   :  { %v27_v3 = vmul.f32 %v26_v2, %v24_v0  ;;  %v31_v4 = vstv %s82_s15  ;;  %s90_s23 = sld [smem:[#allocation2 + $0x7]] }
  0x17   :  { %v32_v5 = vmul.f32 %v81_v1, %v31_v4  ;;  %v35_v6 = vstv %s83_s16  ;;  %s91_s24 = sld [smem:[#allocation2 + $0x8]] }
  0x18   :  { %v44_v7 = vstv %s85_s17 }
  0x19   :  { %v33_v8 = vadd.f32 %v32_v5, %v27_v3  ;;  %v45_v9 = vmul.f32 %v44_v7, %v24_v0  ;;  %v47_v10 = vstv %s86_s0 }
  0x1a   :  { %v48_v11 = vmul.f32 %v81_v1, %v47_v10  ;;  %v51_v13 = vstv %s87_s22 }
  0x1b   :  { %v36_v12 = vadd.f32 %v35_v6, %v33_v8  ;;  %v60_v22 = vstv %s89_s1 }
  0x1c   :  { %v49_v14 = vadd.f32 %v48_v11, %v45_v9  ;;  %v63_v24 = vstv %s90_s23 }
  0x1d   :  { %v84_v15 = vmul.f32 -1.442695, %v36_v12  ;;  %v67_v28 = vstv %s91_s24 }
  0x1e   :  { %v52_v16 = vadd.f32 %v51_v13, %v49_v14 }
  0x1f   :  { %94 = vpow2.f32 %v84_v15 }
  0x20   :  { %v88_v17 = vmul.f32 -1.442695, %v52_v16 }
  0x22   :  { %96 = vpow2.f32 %v88_v17 }
  0x2c   :  { %v95_v18 = vpop.eup %94 }
  0x2d   :  { %v40_v19 = vadd.f32 1.0, %v95_v18 }
  0x2f   :  { %v97_v20 = vpop.eup %96  ;;  %98 = vrcp.f32 %v40_v19 }
  0x30   :  { %v56_v21 = vadd.f32 1.0, %v97_v20 }
  0x32   :  { %100 = vrcp.f32 %v56_v21 }
  0x3c   :  { %v99_v23 = vpop.eup %98 }
  0x3d   :  { %v61_v25 = vmul.f32 %v99_v23, %v60_v22 }
  0x3f   :  { %v101_v26 = vpop.eup %100 }
  0x40   :  { %v64_v27 = vmul.f32 %v101_v26, %v63_v24 }
  0x42   :  { %v65_v29 = vadd.f32 %v64_v27, %v61_v25 }
  0x44   :  { %v68_v30 = vadd.f32 %v67_v28, %v65_v29 }
  0x46   :  { %v92_v31 = vmul.f32 -1.442695, %v68_v30 }
  0x48   :  { %102 = vpow2.f32 %v92_v31 }
  0x55   :  { %v103_v32 = vpop.eup %102 }
  0x56   :  { %v72_v33 = vadd.f32 1.0, %v103_v32 }
  0x58   :  { %104 = vrcp.f32 %v72_v33 }
  0x65   :  { %v105_v34 = vpop.eup %104 }
  0x66   :  { %75 = vst [vmem:[%s150_s2] sm:$0x1] %v105_v34 }
  0x67   :  { %80 = vsyncpa [#allocation3], 1 }

</bundles_post_ra>
